<compile_context>
chip_gen: v7x
topology: tpu7x:2x2x1
jax: 0.10.0
libtpu: 0.0.40
codegen_flags: <defaults>
</compile_context>

<pallas_src>
import functools

import jax
import jax.numpy as jnp
from jax.experimental import pallas as pl
from jax.experimental.pallas import tpu as pltpu


# --------------------------------------------------------------------------- #
# Kernels
# --------------------------------------------------------------------------- #
def _conv_pool_kernel(xee_ref, xeo_ref, xoe_ref, xoo_ref, xpe_ref, xpo_ref,
                      w_ref, raw_ref, stats_ref, *, wout):
    """One (batch, row-tile) step in channel-major layout.

    x??_ref  : (Cin, tm)    stride-2 quadrants, tm = th*Wout flattened pixels
               ee/eo: even rows, even/odd cols; oe/oo: odd rows; pe/po: previous
               odd row (2i-1) even/odd cols (zero for the first output row).
    w_ref    : (Cconv, 9*Cin)  taps ordered (kh, kw, cin)
    raw_ref  : (Cout, tm)   un-normalized concat([conv, pool])
    stats_ref: (Cout, 2)    per-tile per-channel [sum, centered-M2]
    """
    cconv = w_ref.shape[0]
    cin, tm = xee_ref.shape

    ee = xee_ref[...]
    eo = xeo_ref[...]
    oe = xoe_ref[...]
    oo = xoo_ref[...]
    pe = xpe_ref[...]
    po = xpo_ref[...]

    # kw=0 tap needs original column 2j-1 = odd-col quadrant at j-1: shift one
    # lane right inside every Wout-long row segment, zero at j=0 (left padding).
    lane = jax.lax.broadcasted_iota(jnp.int32, (cin, tm), 1)
    row_start = (lane % wout) == 0

    def shift_col(v):
        return jnp.where(row_start, 0.0, pltpu.roll(v, shift=1, axis=1))

    # 9 taps, (kh, kw) row-major, stacked along the sublane (K) axis only.
    rhs = jnp.concatenate(
        [shift_col(po), pe, po,        # kh = 0  (rows 2i-1)
         shift_col(eo), ee, eo,        # kh = 1  (rows 2i)
         shift_col(oo), oe, oo],       # kh = 2  (rows 2i+1)
        axis=0)                                            # (9*Cin, tm)

    # Weight as LHS -> MXU output dim is spatial -> lane-dense result.
    # Conv bias omitted: training-mode BN mean subtraction cancels it exactly.
    conv = jnp.dot(w_ref[...], rhs, preferred_element_type=jnp.float32)  # (Cconv,tm)

    # 2x2 stride-2 max pool = elementwise max of the four quadrants.
    pool = jnp.maximum(jnp.maximum(ee, eo), jnp.maximum(oe, oo))         # (Cin, tm)

    # Lane-dense stores (full tm lanes each).
    raw_ref[0:cconv, :] = conv
    raw_ref[cconv:, :] = pool

    # Per-tile BatchNorm partials: per-channel sum and mean-centered M2
    # (combined across tiles with Chan's formula outside the kernel).
    full = raw_ref[...]                                    # (Cout, tm)
    s = jnp.sum(full, axis=1, keepdims=True)
    mu = s * (1.0 / tm)
    d = full - mu
    m2 = jnp.sum(d * d, axis=1, keepdims=True)
    stats_ref[...] = jnp.concatenate([s, m2], axis=1)


def _bn_relu_kernel(scale_ref, shift_ref, x_ref, o_ref):
    """Fused BatchNorm apply (precomputed per-channel scale/shift) + ReLU."""
    o_ref[...] = jnp.maximum(x_ref[...] * scale_ref[...] + shift_ref[...], 0.0)


# --------------------------------------------------------------------------- #
# Tiling helpers
# --------------------------------------------------------------------------- #
def _vmem_capacity_bytes():
    cap = 64 * 1024 * 1024                       # conservative default (v7x)
    try:
        info = pltpu.get_tpu_info()
        cap = int(getattr(info, "vmem_capacity_bytes", cap))
    except Exception:
        pass
    return cap


def _pick_row_tile(hout, wout, cin, cconv, cout, budget_bytes, max_rows=None):
    """Largest row tile th (divisor of Hout) whose padded, double-buffered VMEM
    footprint fits the budget.  th*Wout must be a multiple of 128 (lane-dense
    blocks) or cover the full flattened spatial extent."""
    def rup(v, m):
        return -(-v // m) * m

    def vmem_bytes(th):
        tl = rup(th * wout, 128)                            # lane-padded tile width
        in_blk = rup(cin, 8) * tl
        out_blk = rup(cout, 8) * tl
        pipeline = 2 * (6 * in_blk + out_blk)               # double-buffered DMA tiles
        temps = (rup(9 * cin, 8) + 5 * rup(cin, 8) + rup(cconv, 8)
                 + 2 * rup(cout, 8)) * tl                   # rhs, shifts, pool, readback
        return 4 * (pipeline + temps)

    divisors = [d for d in range(1, hout + 1) if hout % d == 0]
    cands = [d for d in divisors if d == hout or (d * wout) % 128 == 0]
    if max_rows is not None:
        capped = [d for d in cands if d <= max_rows]
        cands = capped or cands
    for d in sorted(cands, reverse=True):
        if vmem_bytes(d) <= budget_bytes:
            return d
    return min(cands, key=vmem_bytes)


# --------------------------------------------------------------------------- #
# Wrapper
# --------------------------------------------------------------------------- #
def downsampler_block(x_nchw, w_oihw, bias, gamma, beta, *, eps=1e-3,
                      max_tile_rows=None):
    """DownsamplerBlock forward.  NCHW in, NCHW out (matches the PyTorch module)."""
    del bias  # exactly cancelled by training-mode BatchNorm mean subtraction
    n, cin, h, w = x_nchw.shape
    assert h % 2 == 0 and w % 2 == 0, "DownsamplerBlock requires even H and W"
    cconv = w_oihw.shape[0]
    cout = cconv + cin
    hout, wout = h // 2, w // 2
    sp = hout * wout
    f32 = jnp.float32

    x = x_nchw.astype(f32)
    # Stride-2 quadrants, kept channel-major (NCHW) and flattened over (Hout, Wout)
    # so the kernel's lane axis is spatial.  No transpose, no full-image pad.
    xee = x[:, :, 0::2, 0::2]
    xeo = x[:, :, 0::2, 1::2]
    xoe = x[:, :, 1::2, 0::2]
    xoo = x[:, :, 1::2, 1::2]
    # "Previous odd row" (original row 2i-1): odd-row quadrants shifted down one
    # output row, zero top row = the conv's top padding.
    xpe = jnp.pad(xoe[:, :, :hout - 1, :], ((0, 0), (0, 0), (1, 0), (0, 0)))
    xpo = jnp.pad(xoo[:, :, :hout - 1, :], ((0, 0), (0, 0), (1, 0), (0, 0)))
    quads = [a.reshape(n, cin, sp) for a in (xee, xeo, xoe, xoo, xpe, xpo)]

    # torch (Cconv, Cin, kh, kw) -> (Cconv, (kh, kw, cin)): weight is the MXU LHS.
    w_k = jnp.transpose(w_oihw, (0, 2, 3, 1)).reshape(cconv, 9 * cin).astype(f32)

    vmem_cap = _vmem_capacity_bytes()
    th = _pick_row_tile(hout, wout, cin, cconv, cout,
                        budget_bytes=int(0.35 * vmem_cap), max_rows=max_tile_rows)
    tm = th * wout
    r_tiles = hout // th
    grid = (n, r_tiles)
    cparams = pltpu.CompilerParams(
        dimension_semantics=("parallel", "parallel"),
        vmem_limit_bytes=min(int(0.75 * vmem_cap), 112 * 1024 * 1024))

    quad_spec = pl.BlockSpec((None, cin, tm), lambda i, j: (i, 0, j))
    raw_spec = pl.BlockSpec((None, cout, tm), lambda i, j: (i, 0, j))
    stats_spec = pl.BlockSpec((None, None, cout, 2), lambda i, j: (i, j, 0, 0))
    w_spec = pl.BlockSpec((cconv, 9 * cin), lambda i, j: (0, 0))
    vec_spec = pl.BlockSpec((cout, 1), lambda i, j: (0, 0))

    numel_out = n * sp * cout
    cost1 = pl.CostEstimate(
        flops=int(2 * n * sp * 9 * cin * cconv + 8 * n * sp * cin + 6 * numel_out),
        transcendentals=0,
        bytes_accessed=int(4 * (6 * n * cin * sp + 9 * cin * cconv
                                + numel_out + n * r_tiles * cout * 2)))

    # ---- pass 1: conv + pool + partial BN stats (pipelined, megacore) ----
    raw, stats = pl.pallas_call(
        functools.partial(_conv_pool_kernel, wout=wout),
        out_shape=(jax.ShapeDtypeStruct((n, cout, sp), f32),
                   jax.ShapeDtypeStruct((n, r_tiles, cout, 2), f32)),
        grid_spec=pltpu.PrefetchScalarGridSpec(
            num_scalar_prefetch=0, grid=grid,
            in_specs=[quad_spec] * 6 + [w_spec],
            out_specs=(raw_spec, stats_spec)),
        compiler_params=cparams,
        cost_estimate=cost1,
    )(*quads, w_k)

    # ---- training-mode BN: Chan combine of per-tile (sum, centered M2) ----
    total = n * sp
    tile_sum = stats[..., 0]                                # (N, R, Cout)
    tile_m2 = stats[..., 1]
    mean = jnp.sum(tile_sum, axis=(0, 1)) / total
    tile_mean = tile_sum / tm
    m2 = (jnp.sum(tile_m2, axis=(0, 1))
          + tm * jnp.sum(jnp.square(tile_mean - mean[None, None, :]), axis=(0, 1)))
    var = m2 / total                                        # biased variance
    scale = gamma.astype(f32) * jax.lax.rsqrt(var + eps)
    shift = beta.astype(f32) - mean * scale

    cost2 = pl.CostEstimate(flops=int(3 * numel_out), transcendentals=0,
                            bytes_accessed=int(4 * (2 * numel_out + 2 * cout)))

    # ---- pass 2: fused scale/shift + ReLU, output aliased onto `raw` ----
    # TODO(synk): optionally store `raw` in bf16 on v6e/v7x to halve intermediate
    # HBM traffic (kept f32 here for exact parity with the reference).
    out_flat = pl.pallas_call(
        _bn_relu_kernel,
        out_shape=jax.ShapeDtypeStruct((n, cout, sp), f32),
        grid_spec=pltpu.PrefetchScalarGridSpec(
            num_scalar_prefetch=0, grid=grid,
            in_specs=[vec_spec, vec_spec, raw_spec],
            out_specs=raw_spec),
        compiler_params=cparams,
        cost_estimate=cost2,
        input_output_aliases={2: 0},
    )(scale.reshape(cout, 1), shift.reshape(cout, 1), raw)

    # Flattened-HW split is a free reshape; layout is already NCHW.
    return out_flat.reshape(n, cout, hout, wout)


# --------------------------------------------------------------------------- #
# Pure-JAX reference + self-test
# --------------------------------------------------------------------------- #
def reference(x, w, b, gamma, beta, eps=1e-3):
    """Pure-JAX reference matching the PyTorch forward (training-mode BN, with bias)."""
    conv = jax.lax.conv_general_dilated(
        x, w, window_strides=(2, 2), padding=((1, 1), (1, 1)),
        dimension_numbers=('NCHW', 'OIHW', 'NCHW'),
        precision=jax.lax.Precision.HIGHEST) + b[None, :, None, None]
    pool = jax.lax.reduce_window(x, -jnp.inf, jax.lax.max,
                                 (1, 1, 2, 2), (1, 1, 2, 2), 'VALID')
    out = jnp.concatenate([conv, pool], axis=1)
    mean = out.mean(axis=(0, 2, 3), keepdims=True)
    var = jnp.square(out - mean).mean(axis=(0, 2, 3), keepdims=True)
    y = (out - mean) * jax.lax.rsqrt(var + eps) * gamma[None, :, None, None] \
        + beta[None, :, None, None]
    return jnp.maximum(y, 0.0)


def _run_case(key, n, cin, noutput, hw, max_tile_rows=None):
    cconv = noutput - cin
    kx, kw, kb, kg, kbt = jax.random.split(key, 5)
    x = jax.random.normal(kx, (n, cin, hw, hw), jnp.float32)
    w = 0.2 * jax.random.normal(kw, (cconv, cin, 3, 3), jnp.float32)
    b = 0.1 * jax.random.normal(kb, (cconv,), jnp.float32)
    gamma = 1.0 + 0.1 * jax.random.normal(kg, (noutput,), jnp.float32)
    beta = 0.1 * jax.random.normal(kbt, (noutput,), jnp.float32)

    fn = jax.jit(functools.partial(downsampler_block, max_tile_rows=max_tile_rows))
    out = jax.block_until_ready(fn(x, w, b, gamma, beta))
    ref = jax.block_until_ready(reference(x, w, b, gamma, beta))

    assert out.shape == (n, noutput, hw // 2, hw // 2), out.shape
    err = float(jnp.max(jnp.abs(out - ref)))
    assert jnp.allclose(out, ref, atol=1e-2, rtol=1e-2), err
    return err


if __name__ == "__main__":
    key = jax.random.PRNGKey(0)
    k1, k2 = jax.random.split(key)
    # primary small case (matches the module defaults used in the spec)
    _run_case(k1, n=2, cin=4, noutput=8, hw=16)
    # multi-tile case: exercises R > 1 row tiles, the kh=0 halo arrays and the
    # cross-tile Chan statistics combine.
    _run_case(k2, n=1, cin=8, noutput=24, hw=32, max_tile_rows=8)
    print("KERNEL_OK")
</pallas_src>

<mosaic_0001>
module attributes {stable_mosaic.version = 11 : i64} {
  func.func @_conv_pool_kernel(%arg0: i32, %arg1: i32, %arg2: memref<1x4x64xf32, #tpu.memory_space<vmem>>, %arg3: memref<1x4x64xf32, #tpu.memory_space<vmem>>, %arg4: memref<1x4x64xf32, #tpu.memory_space<vmem>>, %arg5: memref<1x4x64xf32, #tpu.memory_space<vmem>>, %arg6: memref<1x4x64xf32, #tpu.memory_space<vmem>>, %arg7: memref<1x4x64xf32, #tpu.memory_space<vmem>>, %arg8: memref<4x36xf32, #tpu.memory_space<vmem>>, %arg9: memref<1x8x64xf32, #tpu.memory_space<vmem>>, %arg10: memref<1x1x8x2xf32, #tpu.memory_space<vmem>>) attributes {dimension_semantics = [#tpu.dimension_semantics<parallel>, #tpu.dimension_semantics<parallel>], iteration_bounds = array<i64: 2, 1>, scalar_prefetch = 0 : i64, scratch_operands = 0 : i64, tpu.core_type = #tpu.core_type<tc>, window_params = [{transform_indices = @transform_0, window_bounds = array<i64: 1, 4, 64>}, {transform_indices = @transform_1, window_bounds = array<i64: 1, 4, 64>}, {transform_indices = @transform_2, window_bounds = array<i64: 1, 4, 64>}, {transform_indices = @transform_3, window_bounds = array<i64: 1, 4, 64>}, {transform_indices = @transform_4, window_bounds = array<i64: 1, 4, 64>}, {transform_indices = @transform_5, window_bounds = array<i64: 1, 4, 64>}, {pipeline_mode = #tpu.pipeline_mode<synchronous>, transform_indices = @transform_6, window_bounds = array<i64: 4, 36>}, {transform_indices = @transform_7, window_bounds = array<i64: 1, 8, 64>}, {transform_indices = @transform_8, window_bounds = array<i64: 1, 1, 8, 2>}]} {
    %c0 = arith.constant 0 : index
    %c0_0 = arith.constant 0 : index
    %c0_1 = arith.constant 0 : index
    %0 = vector.load %arg2[%c0, %c0_0, %c0_1] : memref<1x4x64xf32, #tpu.memory_space<vmem>>, vector<1x4x64xf32>
    %1 = vector.shape_cast %0 : vector<1x4x64xf32> to vector<4x64xf32>
    %c0_2 = arith.constant 0 : index
    %c0_3 = arith.constant 0 : index
    %c0_4 = arith.constant 0 : index
    %2 = vector.load %arg3[%c0_2, %c0_3, %c0_4] : memref<1x4x64xf32, #tpu.memory_space<vmem>>, vector<1x4x64xf32>
    %3 = vector.shape_cast %2 : vector<1x4x64xf32> to vector<4x64xf32>
    %c0_5 = arith.constant 0 : index
    %c0_6 = arith.constant 0 : index
    %c0_7 = arith.constant 0 : index
    %4 = vector.load %arg4[%c0_5, %c0_6, %c0_7] : memref<1x4x64xf32, #tpu.memory_space<vmem>>, vector<1x4x64xf32>
    %5 = vector.shape_cast %4 : vector<1x4x64xf32> to vector<4x64xf32>
    %c0_8 = arith.constant 0 : index
    %c0_9 = arith.constant 0 : index
    %c0_10 = arith.constant 0 : index
    %6 = vector.load %arg5[%c0_8, %c0_9, %c0_10] : memref<1x4x64xf32, #tpu.memory_space<vmem>>, vector<1x4x64xf32>
    %7 = vector.shape_cast %6 : vector<1x4x64xf32> to vector<4x64xf32>
    %c0_11 = arith.constant 0 : index
    %c0_12 = arith.constant 0 : index
    %c0_13 = arith.constant 0 : index
    %8 = vector.load %arg6[%c0_11, %c0_12, %c0_13] : memref<1x4x64xf32, #tpu.memory_space<vmem>>, vector<1x4x64xf32>
    %9 = vector.shape_cast %8 : vector<1x4x64xf32> to vector<4x64xf32>
    %c0_14 = arith.constant 0 : index
    %c0_15 = arith.constant 0 : index
    %c0_16 = arith.constant 0 : index
    %10 = vector.load %arg7[%c0_14, %c0_15, %c0_16] : memref<1x4x64xf32, #tpu.memory_space<vmem>>, vector<1x4x64xf32>
    %11 = vector.shape_cast %10 : vector<1x4x64xf32> to vector<4x64xf32>
    %12 = tpu.iota {dimensions = array<i32: 1>} : vector<4x64xi32>
    %c8_i32 = arith.constant 8 : i32
    %c0_i32 = arith.constant 0 : i32
    %13 = arith.cmpi eq, %c8_i32, %c0_i32 : i32
    %c1_i32 = arith.constant 1 : i32
    %14 = arith.select %13, %c1_i32, %c8_i32 : i32
    %15 = vector.broadcast %14 : i32 to vector<4x64xi32>
    %16 = arith.remsi %12, %15 : vector<4x64xi32>
    %c0_i32_17 = arith.constant 0 : i32
    %17 = vector.broadcast %c0_i32_17 : i32 to vector<4x64xi32>
    %18 = arith.cmpi ne, %16, %17 : vector<4x64xi32>
    %c0_i32_18 = arith.constant 0 : i32
    %19 = vector.broadcast %c0_i32_18 : i32 to vector<4x64xi32>
    %20 = arith.cmpi slt, %16, %19 : vector<4x64xi32>
    %c0_i32_19 = arith.constant 0 : i32
    %21 = arith.cmpi slt, %14, %c0_i32_19 : i32
    %22 = vector.broadcast %21 : i1 to vector<4x64xi1>
    %23 = vector.broadcast %22 : vector<4x64xi1> to vector<4x64xi1>
    %24 = arith.xori %20, %23 : vector<4x64xi1>
    %25 = arith.andi %24, %18 : vector<4x64xi1>
    %26 = vector.broadcast %14 : i32 to vector<4x64xi32>
    %27 = arith.addi %16, %26 : vector<4x64xi32>
    %28 = arith.select %25, %27, %16 : vector<4x64xi1>, vector<4x64xi32>
    %c0_i32_20 = arith.constant 0 : i32
    %29 = vector.broadcast %c0_i32_20 : i32 to vector<4x64xi32>
    %30 = arith.cmpi eq, %28, %29 : vector<4x64xi32>
    %c1_i32_21 = arith.constant 1 : i32
    %31 = tpu.dynamic_rotate %11 by %c1_i32_21 dim 1 : vector<4x64xf32>, i32 -> vector<4x64xf32>
    %cst = arith.constant 0.000000e+00 : f32
    %32 = vector.broadcast %cst : f32 to vector<4x64xf32>
    %33 = arith.select %30, %32, %31 : vector<4x64xi1>, vector<4x64xf32>
    %c1_i32_22 = arith.constant 1 : i32
    %34 = tpu.dynamic_rotate %3 by %c1_i32_22 dim 1 : vector<4x64xf32>, i32 -> vector<4x64xf32>
    %cst_23 = arith.constant 0.000000e+00 : f32
    %35 = vector.broadcast %cst_23 : f32 to vector<4x64xf32>
    %36 = arith.select %30, %35, %34 : vector<4x64xi1>, vector<4x64xf32>
    %c1_i32_24 = arith.constant 1 : i32
    %37 = tpu.dynamic_rotate %7 by %c1_i32_24 dim 1 : vector<4x64xf32>, i32 -> vector<4x64xf32>
    %cst_25 = arith.constant 0.000000e+00 : f32
    %38 = vector.broadcast %cst_25 : f32 to vector<4x64xf32>
    %39 = arith.select %30, %38, %37 : vector<4x64xi1>, vector<4x64xf32>
    %40 = tpu.concatenate %33, %9, %11, %36, %1, %3, %39, %5, %7 in 0 : vector<4x64xf32>, vector<4x64xf32>, vector<4x64xf32>, vector<4x64xf32>, vector<4x64xf32>, vector<4x64xf32>, vector<4x64xf32>, vector<4x64xf32>, vector<4x64xf32> -> vector<36x64xf32>
    %c0_26 = arith.constant 0 : index
    %c0_27 = arith.constant 0 : index
    %41 = vector.load %arg8[%c0_26, %c0_27] : memref<4x36xf32, #tpu.memory_space<vmem>>, vector<4x36xf32>
    %cst_28 = arith.constant dense<0.000000e+00> : vector<4x64xf32>
    %42 = tpu.matmul %41, %40, %cst_28 {dimension_numbers = #tpu.dot_dimension_numbers<[1], [0], [0], [1], [0, 0, 1, 1], [], []>} : vector<4x36xf32>, vector<36x64xf32>, vector<4x64xf32> -> vector<4x64xf32>
    %43 = arith.maximumf %1, %3 : vector<4x64xf32>
    %44 = arith.maximumf %5, %7 : vector<4x64xf32>
    %45 = arith.maximumf %43, %44 : vector<4x64xf32>
    %c0_29 = arith.constant 0 : index
    %c0_30 = arith.constant 0 : index
    %c0_31 = arith.constant 0 : index
    %46 = vector.load %arg9[%c0_29, %c0_30, %c0_31] : memref<1x8x64xf32, #tpu.memory_space<vmem>>, vector<1x4x64xf32>
    %47 = vector.shape_cast %46 : vector<1x4x64xf32> to vector<4x64xf32>
    %48 = vector.shape_cast %42 : vector<4x64xf32> to vector<1x4x64xf32>
    tpu.vector_store %arg9[%c0_29, %c0_30, %c0_31], %48 {strides = array<i32>} : memref<1x8x64xf32, #tpu.memory_space<vmem>>, vector<1x4x64xf32>,
    %c0_32 = arith.constant 0 : index
    %c4 = arith.constant 4 : index
    %c0_33 = arith.constant 0 : index
    %49 = vector.load %arg9[%c0_32, %c4, %c0_33] : memref<1x8x64xf32, #tpu.memory_space<vmem>>, vector<1x4x64xf32>
    %50 = vector.shape_cast %49 : vector<1x4x64xf32> to vector<4x64xf32>
    %51 = vector.shape_cast %45 : vector<4x64xf32> to vector<1x4x64xf32>
    tpu.vector_store %arg9[%c0_32, %c4, %c0_33], %51 {strides = array<i32>} : memref<1x8x64xf32, #tpu.memory_space<vmem>>, vector<1x4x64xf32>,
    %c0_34 = arith.constant 0 : index
    %c0_35 = arith.constant 0 : index
    %c0_36 = arith.constant 0 : index
    %52 = vector.load %arg9[%c0_34, %c0_35, %c0_36] : memref<1x8x64xf32, #tpu.memory_space<vmem>>, vector<1x8x64xf32>
    %53 = vector.shape_cast %52 : vector<1x8x64xf32> to vector<8x64xf32>
    %cst_37 = arith.constant dense<0.000000e+00> : vector<8xf32>
    %54 = vector.multi_reduction <add>, %53, %cst_37 [1] : vector<8x64xf32> to vector<8xf32>
    %55 = vector.shape_cast %54 : vector<8xf32> to vector<8x1xf32>
    %cst_38 = arith.constant 1.562500e-02 : f32
    %56 = vector.broadcast %cst_38 : f32 to vector<8x1xf32>
    %57 = arith.mulf %55, %56 : vector<8x1xf32>
    %58 = vector.broadcast %57 : vector<8x1xf32> to vector<8x64xf32>
    %59 = arith.subf %53, %58 : vector<8x64xf32>
    %60 = arith.mulf %59, %59 : vector<8x64xf32>
    %cst_39 = arith.constant dense<0.000000e+00> : vector<8xf32>
    %61 = vector.multi_reduction <add>, %60, %cst_39 [1] : vector<8x64xf32> to vector<8xf32>
    %62 = vector.shape_cast %61 : vector<8xf32> to vector<8x1xf32>
    %63 = tpu.concatenate %55, %62 in 1 : vector<8x1xf32>, vector<8x1xf32> -> vector<8x2xf32>
    %c0_40 = arith.constant 0 : index
    %c0_41 = arith.constant 0 : index
    %c0_42 = arith.constant 0 : index
    %c0_43 = arith.constant 0 : index
    %64 = vector.load %arg10[%c0_40, %c0_41, %c0_42, %c0_43] : memref<1x1x8x2xf32, #tpu.memory_space<vmem>>, vector<1x1x8x2xf32>
    %65 = vector.shape_cast %64 : vector<1x1x8x2xf32> to vector<8x2xf32>
    %66 = vector.shape_cast %63 : vector<8x2xf32> to vector<1x1x8x2xf32>
    tpu.vector_store %arg10[%c0_40, %c0_41, %c0_42, %c0_43], %66 {strides = array<i32>} : memref<1x1x8x2xf32, #tpu.memory_space<vmem>>, vector<1x1x8x2xf32>,
    return
  }
  func.func @transform_0(%arg0: i32, %arg1: i32) -> (i32, i32, i32) {
    %c0_i32 = arith.constant 0 : i32
    %c0_i32_0 = arith.constant 0 : i32
    return %arg0, %c0_i32, %arg1 : i32, i32, i32
  }
  func.func @transform_1(%arg0: i32, %arg1: i32) -> (i32, i32, i32) {
    %c0_i32 = arith.constant 0 : i32
    %c0_i32_0 = arith.constant 0 : i32
    return %arg0, %c0_i32, %arg1 : i32, i32, i32
  }
  func.func @transform_2(%arg0: i32, %arg1: i32) -> (i32, i32, i32) {
    %c0_i32 = arith.constant 0 : i32
    %c0_i32_0 = arith.constant 0 : i32
    return %arg0, %c0_i32, %arg1 : i32, i32, i32
  }
  func.func @transform_3(%arg0: i32, %arg1: i32) -> (i32, i32, i32) {
    %c0_i32 = arith.constant 0 : i32
    %c0_i32_0 = arith.constant 0 : i32
    return %arg0, %c0_i32, %arg1 : i32, i32, i32
  }
  func.func @transform_4(%arg0: i32, %arg1: i32) -> (i32, i32, i32) {
    %c0_i32 = arith.constant 0 : i32
    %c0_i32_0 = arith.constant 0 : i32
    return %arg0, %c0_i32, %arg1 : i32, i32, i32
  }
  func.func @transform_5(%arg0: i32, %arg1: i32) -> (i32, i32, i32) {
    %c0_i32 = arith.constant 0 : i32
    %c0_i32_0 = arith.constant 0 : i32
    return %arg0, %c0_i32, %arg1 : i32, i32, i32
  }
  func.func @transform_6(%arg0: i32, %arg1: i32) -> (i32, i32) {
    %c0_i32 = arith.constant 0 : i32
    %c0_i32_0 = arith.constant 0 : i32
    %c0_i32_1 = arith.constant 0 : i32
    return %c0_i32, %c0_i32_0 : i32, i32
  }
  func.func @transform_7(%arg0: i32, %arg1: i32) -> (i32, i32, i32) {
    %c0_i32 = arith.constant 0 : i32
    %c0_i32_0 = arith.constant 0 : i32
    return %arg0, %c0_i32, %arg1 : i32, i32, i32
  }
  func.func @transform_8(%arg0: i32, %arg1: i32) -> (i32, i32, i32, i32) {
    %c0_i32 = arith.constant 0 : i32
    %c0_i32_0 = arith.constant 0 : i32
    %c0_i32_1 = arith.constant 0 : i32
    return %arg0, %arg1, %c0_i32, %c0_i32_0 : i32, i32, i32, i32
  }
}

module attributes {stable_mosaic.version = 11 : i64} {
  func.func @_bn_relu_kernel(%arg0: i32, %arg1: i32, %arg2: memref<8x1xf32, #tpu.memory_space<vmem>>, %arg3: memref<8x1xf32, #tpu.memory_space<vmem>>, %arg4: memref<1x8x64xf32, #tpu.memory_space<vmem>>, %arg5: memref<1x8x64xf32, #tpu.memory_space<vmem>>) attributes {dimension_semantics = [#tpu.dimension_semantics<parallel>, #tpu.dimension_semantics<parallel>], iteration_bounds = array<i64: 2, 1>, scalar_prefetch = 0 : i64, scratch_operands = 0 : i64, tpu.core_type = #tpu.core_type<tc>, window_params = [{pipeline_mode = #tpu.pipeline_mode<synchronous>, transform_indices = @transform_0, window_bounds = array<i64: 8, 1>}, {pipeline_mode = #tpu.pipeline_mode<synchronous>, transform_indices = @transform_1, window_bounds = array<i64: 8, 1>}, {transform_indices = @transform_2, window_bounds = array<i64: 1, 8, 64>}, {transform_indices = @transform_3, window_bounds = array<i64: 1, 8, 64>}]} {
    %c0 = arith.constant 0 : index
    %c0_0 = arith.constant 0 : index
    %c0_1 = arith.constant 0 : index
    %0 = vector.load %arg4[%c0, %c0_0, %c0_1] : memref<1x8x64xf32, #tpu.memory_space<vmem>>, vector<1x8x64xf32>
    %1 = vector.shape_cast %0 : vector<1x8x64xf32> to vector<8x64xf32>
    %c0_2 = arith.constant 0 : index
    %c0_3 = arith.constant 0 : index
    %2 = vector.load %arg2[%c0_2, %c0_3] : memref<8x1xf32, #tpu.memory_space<vmem>>, vector<8x1xf32>
    %3 = vector.broadcast %2 : vector<8x1xf32> to vector<8x64xf32>
    %4 = arith.mulf %1, %3 : vector<8x64xf32>
    %c0_4 = arith.constant 0 : index
    %c0_5 = arith.constant 0 : index
    %5 = vector.load %arg3[%c0_4, %c0_5] : memref<8x1xf32, #tpu.memory_space<vmem>>, vector<8x1xf32>
    %6 = vector.broadcast %5 : vector<8x1xf32> to vector<8x64xf32>
    %7 = arith.addf %4, %6 : vector<8x64xf32>
    %cst = arith.constant 0.000000e+00 : f32
    %8 = vector.broadcast %cst : f32 to vector<8x64xf32>
    %9 = arith.maximumf %7, %8 : vector<8x64xf32>
    %c0_6 = arith.constant 0 : index
    %c0_7 = arith.constant 0 : index
    %c0_8 = arith.constant 0 : index
    %10 = vector.load %arg5[%c0_6, %c0_7, %c0_8] : memref<1x8x64xf32, #tpu.memory_space<vmem>>, vector<1x8x64xf32>
    %11 = vector.shape_cast %10 : vector<1x8x64xf32> to vector<8x64xf32>
    %12 = vector.shape_cast %9 : vector<8x64xf32> to vector<1x8x64xf32>
    tpu.vector_store %arg5[%c0_6, %c0_7, %c0_8], %12 {strides = array<i32>} : memref<1x8x64xf32, #tpu.memory_space<vmem>>, vector<1x8x64xf32>,
    return
  }
  func.func @transform_0(%arg0: i32, %arg1: i32) -> (i32, i32) {
    %c0_i32 = arith.constant 0 : i32
    %c0_i32_0 = arith.constant 0 : i32
    %c0_i32_1 = arith.constant 0 : i32
    return %c0_i32, %c0_i32_0 : i32, i32
  }
  func.func @transform_1(%arg0: i32, %arg1: i32) -> (i32, i32) {
    %c0_i32 = arith.constant 0 : i32
    %c0_i32_0 = arith.constant 0 : i32
    %c0_i32_1 = arith.constant 0 : i32
    return %c0_i32, %c0_i32_0 : i32, i32
  }
  func.func @transform_2(%arg0: i32, %arg1: i32) -> (i32, i32, i32) {
    %c0_i32 = arith.constant 0 : i32
    %c0_i32_0 = arith.constant 0 : i32
    return %arg0, %c0_i32, %arg1 : i32, i32, i32
  }
  func.func @transform_3(%arg0: i32, %arg1: i32) -> (i32, i32, i32) {
    %c0_i32 = arith.constant 0 : i32
    %c0_i32_0 = arith.constant 0 : i32
    return %arg0, %c0_i32, %arg1 : i32, i32, i32
  }
}

</mosaic_0001>

<bundles_post_ra>
// kernel: downsampler_block.3
= control target key start
LH: loop header
LB: loop body
LE: loop exit
PB: predicated region body
PF: predicated region fallthrough
CT: control target
= control target key end

     0   :  { %s369_s12 = smov 0   ;;  %s371_s13 = smov 0   ;;  %s405_s0 = inlined_call_operand.vmem [shape: f32[8,1], index: 0, kind: input, shape index: {}]   ;;  %s406_s1 = inlined_call_operand.vmem [shape: f32[8,1], index: 1, kind: input, shape index: {}]   ;;  %s407_s2 = inlined_call_operand.vmem [shape: f32[2,8,64], index: 2, kind: input, shape index: {}, may-alias: {2,3}]   ;;  %s408_s3 = inlined_call_operand.vmem [shape: f32[2,8,64], index: 3, kind: output, shape index: {}, may-alias: {2,3}]  }
   0x1   :  { %s373_s14 = smov 0  }
   0x2 LB: > { %s25_s15 = sadd.s32 1, %s342_s13  ;;  %p293_p0 = scmp.ge.s32.totalorder %s346_s14, 1  ;;  %s346_s14 = sphi %s373_s14, %s13_s14   ;;  %s342_s13 = sphi %s371_s13, %s410_s13   ;;  %s338_s12 = sphi %s369_s12, %s409_s12  }
   0x3   : > { %p27_p1 = scmp.ge.s32.totalorder %s25_s15, 2  ;;  %p155_p2 = scmp.lt.s32.totalorder %s346_s14, 3 }
   0x5   : > { %s412_s15 = smov (%p27_p1, %s25_s15), 0  ;;  %p156_p3 = pnand %p293_p0, %p155_p2 }
   0x6   : > { %v198_v0 = vld [vmem:[%s405_s0] sm:$0xff] (!%p156_p3)  ;;  %v348_v1 = vmov (!%p156_p3), 0   ;;  %p183_p4 = scmp.lt.s32.totalorder (!%p156_p3), %s338_s12, 1  ;;  %vm213_vm0 = vcmask (!%p156_p3), 523264  }
   0x7   : > { %159 = sbr.rel (%p156_p3) target bundleno = 145 (0x91), region = 32  ;;  %323 = vset.pattern.permute.xlu0 (!%p156_p3), %v348_v1  ;;  %v205_v2 = vld [vmem:[%s406_s1] sm:$0xff] (!%p156_p3) }
   0x8   : > { %201 = vperm.xlu0 (!%p156_p3), %323, %v198_v0  }
   0xc   : > { %208 = vperm.xlu0 (!%p156_p3), %323, %v205_v2  }
   0xe   : > { %s414_s12 = smov (!%p183_p4, %s338_s12), 1 }
   0xf   : > { %s294_s20 = sshll.u32 %s414_s12, 3 }
  0x10   : > { %s189_s23 = scalar_lea.vmem %s407_s2, %s294_s20  ;;  %s196_s26 = scalar_lea.vmem %s408_s3, %s294_s20 }
  0x11   : > { %v197_v4 = vld [vmem:[%s189_s23] sm:$0xff] }
  0x87   : > { %v202_v3 = vpop.permute.xlu0 %201 }
  0x88   : > { %v204_v5 = vmul.f32 %v202_v3, %v197_v4 }
  0x8b   : > { %v209_v6 = vpop.permute.xlu0 %208 }
  0x8c   : > { %v211_v7 = vadd.f32 %v209_v6, %v204_v5 }
  0x8e   : > { %v212_v8 = vmax.f32 %v211_v7, 0.0 }
  0x90   : > { %214 = vst.msk [vmem:[%s196_s26] sm:$0xff] %vm213_vm0, %v212_v8 }
  0x91 PF: > { %s13_s14 = sadd.s32 1, %s346_s14   ;;  %s409_s12 = smov %s342_s13 }
  0x92   : > { %p10_p5 = scmp.ge.s32.totalorder %s13_s14, 4   ;;  %s410_s13 = smov %s412_s15 }
  0x94   :  { %12 = sbr.rel (!%p10_p5) target bundleno = 2 (0x2), region = 62 }

// kernel: downsampler_block.2
= control target key start
LH: loop header
LB: loop body
LE: loop exit
PB: predicated region body
PF: predicated region fallthrough
CT: control target
= control target key end

     0   :  { %s997_s27 = smov 0   ;;  %s999_s28 = smov 0   ;;  %s1091_s0 = inlined_call_operand.vmem [shape: f32[2,4,64], index: 0, kind: input, shape index: {}]   ;;  %s1092_s1 = inlined_call_operand.vmem [shape: f32[2,4,64], index: 1, kind: input, shape index: {}]   ;;  %s1093_s2 = inlined_call_operand.vmem [shape: f32[2,4,64], index: 2, kind: input, shape index: {}]   ;;  %s1094_s3 = inlined_call_operand.vmem [shape: f32[2,4,64], index: 3, kind: input, shape index: {}]   ;;  %s1095_s4 = inlined_call_operand.vmem [shape: f32[2,4,64], index: 4, kind: input, shape index: {}]   ;;  %s1096_s5 = inlined_call_operand.vmem [shape: f32[2,4,64], index: 5, kind: input, shape index: {}]   ;;  %s1097_s6 = inlined_call_operand.vmem [shape: f32[4,36], index: 6, kind: input, shape index: {}]   ;;  %s1098_s7 = inlined_call_operand.vmem [shape: f32[2,8,64], index: 7, kind: output, shape index: {0}]   ;;  %s1099_s8 = inlined_call_operand.vmem [shape: f32[2,1,8,2], index: 8, kind: output, shape index: {1}]  }
   0x1   :  { %s1001_s29 = smov 0  }
   0x2 LB: > { %s31_s30 = sadd.s32 1, %s941_s28  ;;  %p856_p0 = scmp.ge.s32.totalorder %s945_s29, 1  ;;  %s945_s29 = sphi %s1001_s29, %s19_s29   ;;  %s941_s28 = sphi %s999_s28, %s1103_s28   ;;  %s937_s27 = sphi %s997_s27, %s1102_s27  }
   0x3   : > { %p33_p1 = scmp.ge.s32.totalorder %s31_s30, 2  ;;  %p355_p2 = scmp.lt.s32.totalorder %s945_s29, 3 }
   0x5   : > { %s1105_s30 = smov (%p33_p1, %s31_s30), 0  ;;  %p356_p3 = pnand %p856_p0, %p355_p2 }
   0x6   : > { %p435_p4 = scmp.lt.s32.totalorder (!%p356_p3), %s937_s27, 1  ;;  %s947_s19 = smov (!%p356_p3), 64   ;;  %vm512_vm0 = vcmask (!%p356_p3), 1048064   ;;  %v948_v9 = vmov (!%p356_p3), 0.0|0.0   ;;  %vm950_vm1 = vmmov (!%p356_p3), 0   ;;  %v951_v21 = vmov (!%p356_p3), 0.0  }
   0x7   : > { %359 = sbr.rel (%p356_p3) target bundleno = 896 (0x380), region = 48  ;;  %888 = vmatprep.subr.bf16.mxu0 (!%p356_p3), %v948_v9  ;;  %s949_s26 = smov (!%p356_p3), 65   ;;  %885 = vmatprep.mubr.msk.f32.mxu0 (!%p356_p3), %vm950_vm1, %v951_v21  ;;  %v497_v22 = vlaneseq (!%p356_p3)  ;;  %vm558_vm3 = vcmask (!%p356_p3), 1043456   ;;  %v563_v43 = vld [vmem:[%s1097_s6] sm:$0xf] (!%p356_p3)  ;;  %vm564_vm4 = vcmask (!%p356_p3), 293888  }
   0x8   : > { %vm644_vm5 = vcmask (!%p356_p3), 519168   ;;  %vm648_vm6 = vcmask (!%p356_p3), 523264   ;;  %vm658_vm7 = vcmask (!%p356_p3), 7168   ;;  %vm660_vm8 = vcmask (!%p356_p3), 15360  }
   0x9   : > { %v498_v23 = vand.u32 (!%p356_p3), 127, %v497_v22 }
   0xb   : > { %v503_v24 = vand.u32 (!%p356_p3), 7, %v498_v23 }
   0xd   : > { %vm1056_vm2 = vcmp.eq.s32.totalorder (!%p356_p3), %v503_v24, 0 }
   0xe   : > { %s1107_s27 = smov (!%p435_p4, %s937_s27), 1 }
   0xf   : > { %s1018_s9 = sshll.u32 %s1107_s27, 2  ;;  %s863_s14 = sshll.u32 %s1107_s27, 3 }
  0x10   : > { %s448_s12 = scalar_lea.vmem %s1092_s1, %s1018_s9  ;;  %s476_s15 = scalar_lea.vmem %s1096_s5, %s1018_s9 }
  0x11   : > { %v492_v0 = vld [vmem:[%s448_s12] sm:$0xf]  ;;  %s462_s18 = scalar_lea.vmem %s1094_s3, %s1018_s9  ;;  %s455_s22 = scalar_lea.vmem %s1093_s2, %s1018_s9 }
  0x12   : > { %524 = vrot.lane.b32.xlu0 %v492_v0, %s947_s19  ;;  %v1032_v1 = vld [vmem:[%s462_s18] sm:$0xf]  ;;  %s441_s25 = scalar_lea.vmem %s1091_s0, %s1018_s9  ;;  %s469_s12 = scalar_lea.vmem %s1095_s4, %s1018_s9  ;;  %v553_v31 = vrot.slane %v492_v0, 4 }
  0x13   : > { %v496_v2 = vld [vmem:[%s476_s15] sm:$0xf]  ;;  %535 = vrot.lane.b32.xlu1 %v1032_v1, %s947_s19  ;;  %s483_s17 = scalar_lea.vmem %s1098_s7, %s863_s14 }
  0x14   : > { %v493_v10 = vld [vmem:[%s455_s22] sm:$0xf] }
  0x15   : > { %v491_v11 = vld [vmem:[%s441_s25] sm:$0xf]  ;;  %v642_v12 = vmax.f32 %v493_v10, %v1032_v1  ;;  %v556_v30 = vrot.slane %v493_v10, 4 }
  0x16   : > { %513 = vrot.lane.b32.xlu0 %v496_v2, %s947_s19  ;;  %v641_v13 = vmax.f32 %v491_v11, %v492_v0  ;;  %v495_v26 = vld [vmem:[%s469_s12] sm:$0xf]  ;;  %v561_v37 = vsel %vm558_vm3, %v491_v11, %v553_v31 }
  0x17   : > { %v547_v32 = vrot.slane %v495_v26, 4 }
  0x18   : > { %v643_v14 = vmax.f32 %v641_v13, %v642_v12 }
  0x1a   : > { %646 = vst.msk [vmem:[%s483_s17 + $0x4] sm:$0xf] %vm644_vm5, %v643_v14 }
  0x84   : > { %v525_v3 = vpop.permute.xlu0 %524 }
  0x85   : > { %v526_v4 = vsel %vm512_vm0, %v525_v3, %v492_v0  ;;  %v536_v5 = vpop.permute.xlu1 %535 }
  0x86   : > { %527 = vrot.lane.b32.xlu1 %v526_v4, %s947_s19  ;;  %v537_v6 = vsel %vm512_vm0, %v536_v5, %v1032_v1 }
  0x88   : > { %v514_v7 = vpop.permute.xlu0 %513 }
  0x89   : > { %v515_v8 = vsel %vm512_vm0, %v514_v7, %v496_v2 }
  0x8a   : > { %516 = vrot.lane.b32.xlu0 %v515_v8, %s947_s19  ;;  %538 = vrot.lane.b32.xlu1 %v537_v6, %s947_s19  ;;  %s490_s19 = scalar_lea.vmem %s1099_s8, %s863_s14 }
  0xf8   : > { %v528_v15 = vpop.permute.xlu1 %527 }
  0xf9   : > { %v529_v16 = vsel %vm512_vm0, %v528_v15, %v492_v0 }
  0xfa   : > { %531 = vrot.lane.b32.xlu0 %v529_v16, %s949_s26 }
  0xfc   : > { %v517_v17 = vpop.permute.xlu0 %516  ;;  %v539_v18 = vpop.permute.xlu1 %538 }
  0xfd   : > { %v518_v19 = vsel %vm512_vm0, %v517_v17, %v496_v2  ;;  %v540_v20 = vsel %vm512_vm0, %v539_v18, %v1032_v1 }
  0xfe   : > { %520 = vrot.lane.b32.xlu1 %v518_v19, %s949_s26  ;;  %542 = vrot.lane.b32.xlu0 %v540_v20, %s949_s26 }
 0x16c   : > { %v532_v27 = vpop.permute.xlu0 %531 }
 0x16d   : > { %v534_v28 = vsel %vm1056_vm2, 0.0, %v532_v27 }
 0x16e   : > { %v550_v29 = vrot.slane %v534_v28, 4 }
 0x170   : > { %v521_v33 = vpop.permute.xlu1 %520  ;;  %v543_v34 = vpop.permute.xlu0 %542  ;;  %v560_v40 = vsel %vm558_vm3, %v496_v2, %v550_v29 }
 0x171   : > { %v523_v35 = vsel %vm1056_vm2, 0.0, %v521_v33  ;;  %v545_v36 = vsel %vm1056_vm2, 0.0, %v543_v34 }
 0x172   : > { %v562_v38 = vsel %vm558_vm3, %v545_v36, %v556_v30  ;;  %v559_v39 = vsel %vm558_vm3, %v523_v35, %v547_v32 }
 0x173   : > { %v889_v41 = vpack.c.bf16 %v560_v40, %v559_v39  ;;  %v892_v42 = vpack.c.bf16 %v562_v38, %v561_v37 }
 0x175   : > { %890 = vmatpush3.bf16.msra.mxu0 %v889_v41 }
 0x176   : > { %891 = vmatprep.subr.bf16.mxu0 %v948_v9 }
 0x179   : > { %893 = vmatpush3.bf16.msra.mxu0 %v892_v42 }
 0x17a   : > { %883 = vmatprep.subr.mxu0 %v951_v21 }
 0x17d   : > { %884 = vmatpush3.msk.msra.mxu0 %vm558_vm3, %v1032_v1 }
 0x17e   : > { %886 = vmatmul.mubr.msk.f32.vlgmr.msra.gmra.mrb[0].mxu0 %vm564_vm4, %v563_v43 }
 0x251   : > { %v637_v44 = vpop.f32.mrb[0].mxu0 }
 0x252   : > { %645 = vst.msk [vmem:[%s483_s17] sm:$0xf] %vm644_vm5, %v637_v44  ;;  %v887_v45 = vpop.f32.mrb[1].mxu0 }
 0x259   : > { %v647_v46 = vld [vmem:[%s483_s17] sm:$0xff] }
 0x25a   : > { %v649_v47 = vsel %vm648_vm6, %v647_v46, 0.0 }
 0x25b   : > { %650 = vadd.xlane.f32.xlu1 %v649_v47 }
 0x2e8   : > { %v651_v48 = vpop.xlane.xlu1 %650 }
 0x2e9   : > { %v652_v49 = vmul.f32 0.015625, %v651_v48 }
 0x2eb   : > { %v653_v50 = vsub.f32 %v647_v46, %v652_v49 }
 0x2ed   : > { %v654_v51 = vmul.f32 %v653_v50, %v653_v50 }
 0x2ef   : > { %v655_v52 = vsel %vm648_vm6, %v654_v51, 0.0 }
 0x2f0   : > { %656 = vadd.xlane.f32.xlu0 %v655_v52 }
 0x37d   : > { %v657_v53 = vpop.xlane.xlu0 %656 }
 0x37e   : > { %v659_v54 = vsel %vm658_vm7, %v651_v48, %v657_v53 }
 0x37f   : > { %661 = vst.msk [vmem:[%s490_s19] sm:$0xff] %vm660_vm8, %v659_v54 }
 0x380 PF: > { %s19_s29 = sadd.s32 1, %s945_s29   ;;  %s1102_s27 = smov %s941_s28 }
 0x381   : > { %p16_p5 = scmp.ge.s32.totalorder %s19_s29, 4   ;;  %s1103_s28 = smov %s1105_s30 }
 0x383   :  { %18 = sbr.rel (!%p16_p5) target bundleno = 2 (0x2), region = 105 }

</bundles_post_ra>
